<compile_context>
chip_gen: v7x
topology: tpu7x:2x2x1
jax: 0.10.0
libtpu: 0.0.40
codegen_flags: <defaults>
</compile_context>

<pallas_src>
import functools

import jax
import jax.numpy as jnp
from jax.experimental import pallas as pl
from jax.experimental.pallas import tpu as pltpu

LANE = 128               # lane width of a vreg
STRIP_ROWS = 128         # rows per inner strip: (128, 128) f32 = 16 vregs/temp
MAX_BLOCK_ROWS = 8192    # (8192, 128) f32 = 4 MiB/stream/buffer -> 16 MiB total
VMEM_LIMIT_BYTES = 32 * 1024 * 1024  # admits double-buffered inputs on v5e too


def _round_up(x, m):
    return ((x + m - 1) // m) * m


def _iou_partial_kernel(x_ref, t_ref, part_ref, *, strip_rows, n_strips_full,
                        n_strips_last, rows_in_last, needs_mask):
    """Per-block lane partial sums of sigmoid(x)*t and sigmoid(x)+t."""

    def strip_sums(j, masked):
        r0 = pl.multiple_of(j * strip_rows, strip_rows)
        x = x_ref[pl.ds(r0, strip_rows), :].astype(jnp.float32)
        t = t_ref[pl.ds(r0, strip_rows), :].astype(jnp.float32)
        s = jax.nn.sigmoid(x)
        st = s * t     # intersection contributions
        spt = s + t    # total contributions
        if masked:
            # Only the last (partial) grid block pays for this path. Row-local
            # int32 indices (< block_rows) so no overflow concerns; jnp.where
            # is a select, so OOB garbage (even NaN/Inf) cannot leak in.
            row_ids = (jax.lax.broadcasted_iota(jnp.int32, st.shape, 0)
                       + j * strip_rows)
            valid = row_ids < rows_in_last
            st = jnp.where(valid, st, 0.0)
            spt = jnp.where(valid, spt, 0.0)
        return (jnp.sum(st, axis=0, keepdims=True),
                jnp.sum(spt, axis=0, keepdims=True))

    def run(n_strips, masked):
        if n_strips == 1:
            inter, tot = strip_sums(0, masked)
        else:
            def body(j, carry):
                inter_c, tot_c = carry
                d_inter, d_tot = strip_sums(j, masked)
                return inter_c + d_inter, tot_c + d_tot

            init = (jnp.zeros((1, LANE), jnp.float32),
                    jnp.zeros((1, LANE), jnp.float32))
            # TODO(synk): sweep fori_loop unroll once bundle dumps are available.
            inter, tot = jax.lax.fori_loop(0, n_strips, body, init)
        # Two direct lane-dense stores (no sublane concat / relayout).
        part_ref[0, 0:1, :] = inter
        part_ref[0, 1:2, :] = tot

    if needs_mask:
        i = pl.program_id(0)
        last = pl.num_programs(0) - 1

        @pl.when(i != last)
        def _():
            run(n_strips_full, masked=False)

        @pl.when(i == last)
        def _():
            run(n_strips_last, masked=True)
    else:
        run(n_strips_full, masked=False)


def iou_loss(inputs, targets, smooth=1.0):
    """Pallas implementation of IoULoss.forward (returns a scalar f32)."""
    x = inputs.reshape(-1)
    t = targets.reshape(-1)
    n = x.shape[0]

    # Lane-misaligned tail (< 128 elements): tiny jnp epilogue instead of
    # jnp.pad-ing (and re-copying) both full streams.
    n_aligned = (n // LANE) * LANE
    tail_inter = jnp.float32(0.0)
    tail_total = jnp.float32(0.0)
    if n_aligned != n:
        xt = jax.lax.slice(x, (n_aligned,), (n,))
        tt = jax.lax.slice(t, (n_aligned,), (n,)).astype(jnp.float32)
        st = jax.nn.sigmoid(xt.astype(jnp.float32))
        tail_inter = jnp.sum(st * tt)
        tail_total = jnp.sum(st + tt)
        x = jax.lax.slice(x, (0,), (n_aligned,))
        t = jax.lax.slice(t, (0,), (n_aligned,))

    if n_aligned == 0:
        intersection = tail_inter
        total = tail_total
    else:
        rows = n_aligned // LANE
        x = x.reshape(rows, LANE)   # contiguous reshape: free
        t = t.reshape(rows, LANE)

        if rows <= STRIP_ROWS:
            # Tiny input: one block covering the whole array, single strip.
            block_rows = rows
            strip_rows = rows
        else:
            # Aim for >= 2 grid steps (v7x dual-TC), strip-aligned blocks,
            # capped so 2 streams x 2 pipeline buffers stay well inside VMEM.
            strip_rows = STRIP_ROWS
            block_rows = min(MAX_BLOCK_ROWS,
                             _round_up(pl.cdiv(rows, 2), STRIP_ROWS))

        num_blocks = pl.cdiv(rows, block_rows)
        rows_in_last = rows - (num_blocks - 1) * block_rows
        needs_mask = rows_in_last != block_rows
        n_strips_full = block_rows // strip_rows
        n_strips_last = pl.cdiv(rows_in_last, strip_rows)

        kernel = functools.partial(
            _iou_partial_kernel,
            strip_rows=strip_rows,          # all static Python ints
            n_strips_full=n_strips_full,
            n_strips_last=n_strips_last,
            rows_in_last=rows_in_last,
            needs_mask=needs_mask,
        )

        partials = pl.pallas_call(
            kernel,
            out_shape=jax.ShapeDtypeStruct((num_blocks, 2, LANE), jnp.float32),
            grid=(num_blocks,),
            in_specs=[
                pl.BlockSpec((block_rows, LANE), lambda i: (i, 0)),
                pl.BlockSpec((block_rows, LANE), lambda i: (i, 0)),
            ],
            out_specs=pl.BlockSpec((1, 2, LANE), lambda i: (i, 0, 0)),
            compiler_params=pltpu.CompilerParams(
                dimension_semantics=("parallel",),
                vmem_limit_bytes=VMEM_LIMIT_BYTES,
            ),
        )(x, t)

        # Tiny epilogue in JAX: cross-block/cross-lane reduce + IoU ratio.
        intersection = jnp.sum(partials[:, 0, :]) + tail_inter
        total = jnp.sum(partials[:, 1, :]) + tail_total

    union = total - intersection
    smooth_f = jnp.float32(smooth)
    iou = (intersection + smooth_f) / (union + smooth_f)
    return jnp.float32(1.0) - iou


def iou_loss_ref(inputs, targets, smooth=1.0):
    """Pure-JAX reference mirroring the PyTorch forward."""
    s = jax.nn.sigmoid(inputs.astype(jnp.float32)).reshape(-1)
    t = targets.astype(jnp.float32).reshape(-1)
    intersection = jnp.sum(s * t)
    total = jnp.sum(s + t)
    union = total - intersection
    iou = (intersection + smooth) / (union + smooth)
    return 1.0 - iou


if __name__ == "__main__":
    key = jax.random.PRNGKey(0)

    # Main case: segmentation-style logits/labels (NCHW), lane-aligned.
    k1, k2, k3, k4, k5, k6 = jax.random.split(key, 6)
    inputs = jax.random.normal(k1, (2, 4, 16, 16), dtype=jnp.float32)
    targets = (jax.random.uniform(k2, (2, 4, 16, 16)) > 0.5).astype(jnp.float32)
    loss = jax.block_until_ready(iou_loss(inputs, targets))
    ref = jax.block_until_ready(iou_loss_ref(inputs, targets))
    assert jnp.allclose(loss, ref, rtol=1e-5, atol=1e-5), (loss, ref)

    # Exercises the multi-block grid + last-block mask path.
    inputs2 = jax.random.normal(k3, (4, 4, 40, 40), dtype=jnp.float32)
    targets2 = (jax.random.uniform(k4, (4, 4, 40, 40)) > 0.5).astype(jnp.float32)
    loss2 = jax.block_until_ready(iou_loss(inputs2, targets2))
    ref2 = jax.block_until_ready(iou_loss_ref(inputs2, targets2))
    assert jnp.allclose(loss2, ref2, rtol=1e-5, atol=1e-5), (loss2, ref2)

    # Exercises the lane-misaligned (ragged tail) path, no padding copy.
    inputs3 = jax.random.normal(k5, (3, 5, 7, 11), dtype=jnp.float32)
    targets3 = (jax.random.uniform(k6, (3, 5, 7, 11)) > 0.5).astype(jnp.float32)
    loss3 = jax.block_until_ready(iou_loss(inputs3, targets3))
    ref3 = jax.block_until_ready(iou_loss_ref(inputs3, targets3))
    assert jnp.allclose(loss3, ref3, rtol=1e-5, atol=1e-5), (loss3, ref3)

    print("KERNEL_OK")
</pallas_src>

<mosaic_0001>
module attributes {stable_mosaic.version = 11 : i64} {
  func.func @_iou_partial_kernel(%arg0: i32, %arg1: memref<16x128xf32, #tpu.memory_space<vmem>>, %arg2: memref<16x128xf32, #tpu.memory_space<vmem>>, %arg3: memref<1x2x128xf32, #tpu.memory_space<vmem>>) attributes {dimension_semantics = [#tpu.dimension_semantics<parallel>], iteration_bounds = array<i64: 1>, scalar_prefetch = 0 : i64, scratch_operands = 0 : i64, tpu.core_type = #tpu.core_type<tc>, window_params = [{transform_indices = @transform_0, window_bounds = array<i64: 16, 128>}, {transform_indices = @transform_1, window_bounds = array<i64: 16, 128>}, {transform_indices = @transform_2, window_bounds = array<i64: 1, 2, 128>}]} {
    %c0_i32 = arith.constant 0 : i32
    %0 = tpu.assume_multiple %c0_i32, 16 : i32
    %1 = arith.index_cast %0 : i32 to index
    %c0 = arith.constant 0 : index
    %2 = vector.load %arg1[%1, %c0] : memref<16x128xf32, #tpu.memory_space<vmem>>, vector<16x128xf32>
    %3 = arith.index_cast %0 : i32 to index
    %c0_0 = arith.constant 0 : index
    %4 = vector.load %arg2[%3, %c0_0] : memref<16x128xf32, #tpu.memory_space<vmem>>, vector<16x128xf32>
    %5 = arith.negf %2 : vector<16x128xf32>
    %6 = math.exp %5 : vector<16x128xf32>
    %cst = arith.constant 1.000000e+00 : f32
    %7 = vector.broadcast %cst : f32 to vector<16x128xf32>
    %8 = arith.addf %7, %6 : vector<16x128xf32>
    %9 = arith.divf %7, %8 : vector<16x128xf32>
    %10 = arith.mulf %9, %4 : vector<16x128xf32>
    %11 = arith.addf %9, %4 : vector<16x128xf32>
    %cst_1 = arith.constant dense<0.000000e+00> : vector<128xf32>
    %12 = vector.multi_reduction <add>, %10, %cst_1 [0] : vector<16x128xf32> to vector<128xf32>
    %13 = vector.shape_cast %12 : vector<128xf32> to vector<1x128xf32>
    %cst_2 = arith.constant dense<0.000000e+00> : vector<128xf32>
    %14 = vector.multi_reduction <add>, %11, %cst_2 [0] : vector<16x128xf32> to vector<128xf32>
    %15 = vector.shape_cast %14 : vector<128xf32> to vector<1x128xf32>
    %c0_3 = arith.constant 0 : index
    %c0_4 = arith.constant 0 : index
    %c0_5 = arith.constant 0 : index
    %16 = vector.load %arg3[%c0_3, %c0_4, %c0_5] : memref<1x2x128xf32, #tpu.memory_space<vmem>>, vector<1x1x128xf32>
    %17 = vector.shape_cast %16 : vector<1x1x128xf32> to vector<1x128xf32>
    %18 = vector.shape_cast %13 : vector<1x128xf32> to vector<1x1x128xf32>
    tpu.vector_store %arg3[%c0_3, %c0_4, %c0_5], %18 {strides = array<i32>} : memref<1x2x128xf32, #tpu.memory_space<vmem>>, vector<1x1x128xf32>,
    %c0_6 = arith.constant 0 : index
    %c1 = arith.constant 1 : index
    %c0_7 = arith.constant 0 : index
    %19 = vector.load %arg3[%c0_6, %c1, %c0_7] : memref<1x2x128xf32, #tpu.memory_space<vmem>>, vector<1x1x128xf32>
    %20 = vector.shape_cast %19 : vector<1x1x128xf32> to vector<1x128xf32>
    %21 = vector.shape_cast %15 : vector<1x128xf32> to vector<1x1x128xf32>
    tpu.vector_store %arg3[%c0_6, %c1, %c0_7], %21 {strides = array<i32>} : memref<1x2x128xf32, #tpu.memory_space<vmem>>, vector<1x1x128xf32>,
    return
  }
  func.func @transform_0(%arg0: i32) -> (i32, i32) {
    %c0_i32 = arith.constant 0 : i32
    %c0_i32_0 = arith.constant 0 : i32
    return %arg0, %c0_i32 : i32, i32
  }
  func.func @transform_1(%arg0: i32) -> (i32, i32) {
    %c0_i32 = arith.constant 0 : i32
    %c0_i32_0 = arith.constant 0 : i32
    return %arg0, %c0_i32 : i32, i32
  }
  func.func @transform_2(%arg0: i32) -> (i32, i32, i32) {
    %c0_i32 = arith.constant 0 : i32
    %c0_i32_0 = arith.constant 0 : i32
    %c0_i32_1 = arith.constant 0 : i32
    return %arg0, %c0_i32, %c0_i32_0 : i32, i32, i32
  }
}

</mosaic_0001>

<bundles_post_ra>
// kernel: tpu_custom_call.1
= control target key start
LH: loop header
LB: loop body
LE: loop exit
PB: predicated region body
PF: predicated region fallthrough
CT: control target
= control target key end

     0   :  { %7 = vsyncpa [#allocation3], 0  ;;  %s235_s0 = inlined_call_operand.hbm [shape: f32[16,128], index: 0, kind: input, shape index: {}]   ;;  %s236_s1 = inlined_call_operand.hbm [shape: f32[16,128], index: 1, kind: input, shape index: {}]   ;;  %s237_s2 = inlined_call_operand.hbm [shape: f32[1,2,128], index: 2, kind: output, shape index: {}]  }
   0x1   :  { %8 = vsyncpa [#allocation6], 0 }
   0x2   :  { %9 = vsyncpa [#allocation4], 0  ;;  %s179_s9 = smov [#allocation2]   ;;  %s107_s13 = scalar_lea.hbm %s235_s0, 256 }
   0x3   :  { %s15_s10 = sshll.u32 %s179_s9, 4  ;;  %p108_p0 = scmp.ne.s32.totalorder %s235_s0, %s107_s13  ;;  %s16_s10 = int_to_ptr.vmem [resolvable:$true] %s15_s10 }
   0x4   :  { %p111_p1 = scmp.lt.u32.totalorder %s107_s13, %s235_s0 }
   0x6   :  { %p113_p2 = pnand %p111_p1, %p108_p0 }
   0x8   :  { %116 = shalt.err (!%p113_p2)
}
   0x9   :  { %s117_s18 = scalar_lea.vmem %s16_s10, 256  ;;  %p122_p4 = scmp.lt.s32.totalorder %s16_s10, %s16_s10 }
   0xa   :  { %p118_p3 = scmp.ne.s32.totalorder %s16_s10, %s117_s18  ;;  %p123_p5 = scmp.lt.s32.totalorder %s117_s18, %s117_s18 }
   0xc   :  { %p124_p6 = por %p123_p5, %p122_p4 }
   0xe   :  { %p125_p7 = pnand %p124_p6, %p118_p3 }
  0x10   :  { %128 = shalt.err (!%p125_p7)
}
  0x11   :  { %s180_s19 = smov 128   ;;  %s181_s20 = smov 8  }
  0x12   :  { %21 = dma.hbm_to_vmem [thread:$0]  %s235_s0, 256, %s16_s10, [#allocation3], %s180_s19, %s180_s19, %s181_s20  }
  0x13   :  { %s182_s23 = smov [#allocation5]   ;;  %s129_s27 = scalar_lea.hbm %s236_s1, 256 }
  0x14   :  { %s27_s24 = sshll.u32 %s182_s23, 4  ;;  %p130_p8 = scmp.ne.s32.totalorder %s236_s1, %s129_s27  ;;  %s28_s24 = int_to_ptr.vmem [resolvable:$true] %s27_s24 }
  0x15   :  { %p133_p9 = scmp.lt.u32.totalorder %s129_s27, %s236_s1 }
  0x17   :  { %p135_p10 = pnand %p133_p9, %p130_p8 }
  0x19   :  { %138 = shalt.err (!%p135_p10)
}
  0x1a   :  { %s139_s4 = scalar_lea.vmem %s28_s24, 256  ;;  %p144_p12 = scmp.lt.s32.totalorder %s28_s24, %s28_s24 }
  0x1b   :  { %p140_p11 = scmp.ne.s32.totalorder %s28_s24, %s139_s4  ;;  %p145_p13 = scmp.lt.s32.totalorder %s139_s4, %s139_s4 }
  0x1d   :  { %p146_p0 = por %p145_p13, %p144_p12 }
  0x1f   :  { %p147_p1 = pnand %p146_p0, %p140_p11 }
  0x21   :  { %150 = shalt.err (!%p147_p1)
}
  0x22   :  { %33 = dma.hbm_to_vmem [thread:$0]  %s236_s1, 256, %s28_s24, [#allocation6], %s180_s19, %s180_s19, %s181_s20  }
  0x23   :  { %173 = dma.done.wait [#allocation3], 256  }
  0x24   :  { %174 = vsyncadd [#allocation3], 4294967040 }
  0x25   :  { %175 = dma.done.wait [#allocation6], 256  }
  0x26   :  { %176 = vsyncadd [#allocation6], 4294967040  ;;  %v40_v0 = vld [vmem:[#allocation2] sm:$0xff]  ;;  %v41_v1 = vld [vmem:[#allocation2 + $0x8] sm:$0xff]  ;;  %s183_s1 = smov [#allocation7]  }
  0x27   :  { %v92_v2 = vmul.f32 -1.442695, %v40_v0  ;;  %v93_v3 = vmul.f32 -1.442695, %v41_v1  ;;  %v42_v8 = vld [vmem:[#allocation5] sm:$0xff]  ;;  %v43_v9 = vld [vmem:[#allocation5 + $0x8] sm:$0xff] }
  0x28   :  { %s82_s6 = sshll.u32 %s183_s1, 4  ;;  %s83_s6 = int_to_ptr.vmem [resolvable:$true] %s82_s6 }
  0x29   :  { %99 = vpow2.f32 %v92_v2  ;;  %s151_s7 = scalar_lea.vmem %s83_s6, 32  ;;  %p156_p3 = scmp.lt.s32.totalorder %s83_s6, %s83_s6 }
  0x2a   :  { %101 = vpow2.f32 %v93_v3  ;;  %p152_p2 = scmp.ne.s32.totalorder %s83_s6, %s151_s7  ;;  %p157_p4 = scmp.lt.s32.totalorder %s151_s7, %s151_s7 }
  0x2c   :  { %p158_p5 = por %p157_p4, %p156_p3 }
  0x2e   :  { %p159_p6 = pnand %p158_p5, %p152_p2 }
  0x33   :  { %v100_v4 = vpop.eup %99 }
  0x34   :  { %v102_v5 = vpop.eup %101  ;;  %v50_v6 = vadd.f32 1.0, %v100_v4 }
  0x35   :  { %v51_v7 = vadd.f32 1.0, %v102_v5 }
  0x36   :  { %103 = vrcp.f32 %v50_v6 }
  0x37   :  { %105 = vrcp.f32 %v51_v7 }
  0x40   :  { %v104_v10 = vpop.eup %103 }
  0x41   :  { %v106_v11 = vpop.eup %105  ;;  %v56_v12 = vmul.f32 %v104_v10, %v42_v8  ;;  %v58_v13 = vadd.f32 %v104_v10, %v42_v8 }
  0x42   :  { %v57_v14 = vmul.f32 %v106_v11, %v43_v9  ;;  %v59_v15 = vadd.f32 %v106_v11, %v43_v9 }
  0x44   :  { %v60_v16 = vadd.f32 %v57_v14, %v56_v12  ;;  %v67_v17 = vadd.f32 %v59_v15, %v58_v13 }
  0x46   :  { %v61_v18 = vrot.slane %v60_v16, 4  ;;  %v68_v19 = vrot.slane %v67_v17, 4 }
  0x48   :  { %v62_v20 = vadd.f32 %v61_v18, %v60_v16  ;;  %v69_v21 = vadd.f32 %v68_v19, %v67_v17 }
  0x4a   :  { %v63_v22 = vrot.slane %v62_v20, 2  ;;  %v70_v23 = vrot.slane %v69_v21, 2 }
  0x4c   :  { %v64_v24 = vadd.f32 %v63_v22, %v62_v20  ;;  %v71_v25 = vadd.f32 %v70_v23, %v69_v21 }
  0x4e   :  { %v65_v26 = vrot.slane %v64_v24, 1  ;;  %v72_v27 = vrot.slane %v71_v25, 1 }
  0x50   :  { %v66_v28 = vadd.f32 %v65_v26, %v64_v24  ;;  %v73_v29 = vadd.f32 %v72_v27, %v71_v25 }
  0x52   :  { %74 = vst [vmem:[#allocation7] sm:$0x1] %v66_v28  ;;  %75 = vst [vmem:[#allocation7 + $0x1] sm:$0x1] %v73_v29 }
  0x53   :  { %162 = shalt.err (!%p159_p6)
}
  0x54   :  { %s163_s10 = scalar_lea.hbm %s237_s2, 32 }
  0x55   :  { %p164_p7 = scmp.ne.s32.totalorder %s237_s2, %s163_s10  ;;  %p167_p8 = scmp.lt.u32.totalorder %s163_s10, %s237_s2 }
  0x57   :  { %p169_p9 = pnand %p167_p8, %p164_p7 }
  0x59   :  { %172 = shalt.err (!%p169_p9)
}
  0x5a   :  { %85 = dma.vmem_to_hbm [thread:$0]  %s83_s6, 32, %s237_s2, [#allocation4]  }
  0x5b   :  { %177 = dma.done.wait [#allocation4], 32  }
  0x5c   :  { %178 = vsyncadd [#allocation4], 4294967264 }
  0x5d   :  { %89 = vsyncpa [#allocation3], 1 }
  0x5e   :  { %90 = vsyncpa [#allocation6], 1 }
  0x5f   :  { %91 = vsyncpa [#allocation4], 1 }

</bundles_post_ra>
